<compile_context>
chip_gen: v6e
topology: v6e:2x2x1
jax: 0.10.0
libtpu: 0.0.40
codegen_flags: <defaults>
</compile_context>

<pallas_src>
import jax
import jax.numpy as jnp
from jax.experimental import pallas as pl
from jax.experimental.pallas import tpu as pltpu

_LANES = 128                     # packed / output lane width
_FEAT_PAD = 8                    # input features padded 4 -> 8 (sublane aligned)
_HID = 32                        # live hidden lanes: 0:16 actor, 16:32 critic_target
_W_ROWS = _FEAT_PAD + 3 * _HID   # 104 rows in the packed weight slab
_B_ROWS = 4                      # one bias row per layer


def _round_up(n, m):
    return ((n + m - 1) // m) * m


def _choose_tiles(B):
    """Padding-aware batch tiling. Returns (tile_rows, padded_rows, num_tiles)."""
    B8 = _round_up(max(B, 1), 8)
    if B8 <= 1024:
        # Single tile: per-call fixed overhead dominates at this size anyway.
        return B8, B8, 1
    # Large batches: >= 2 tiles (keeps v7x's 2nd TensorCore busy via the
    # "parallel" grid axis), each tile <= 2048 rows, padding waste <= 8 rows/tile.
    n_tiles = max(2, -(-B8 // 2048))
    tb = _round_up(-(-B8 // n_tiles), 8)
    return tb, tb * n_tiles, n_tiles


def _actor_critic_kernel(x_ref, w_ref, b_ref, out_ref):
    f32 = jnp.float32
    x = x_ref[...]                                                        # (TB, 8)

    # Fused hidden chain; only lanes 0:32 are live -> slice before tanh.
    h = jnp.tanh(
        jnp.dot(x, w_ref[0:8, :], preferred_element_type=f32)[:, 0:_HID]
        + b_ref[0:1, 0:_HID])
    h = jnp.tanh(
        jnp.dot(h, w_ref[8:40, :], preferred_element_type=f32)[:, 0:_HID]
        + b_ref[1:2, 0:_HID])
    h = jnp.tanh(
        jnp.dot(h, w_ref[40:72, :], preferred_element_type=f32)[:, 0:_HID]
        + b_ref[2:3, 0:_HID])

    # Fused heads (N=128 -> lane-dense store): lane 0,1 = actor logits,
    # lane 2 = critic_target value, lanes 3:128 stay exactly zero.
    out = jnp.dot(h, w_ref[72:104, :], preferred_element_type=f32) + b_ref[3:4, :]

    # 2-class softmax == sigmoid of the logit gap, sign-stable form:
    # only exponentiate the non-positive difference (no overflow for large gaps).
    l0 = out[:, 0:1]
    l1 = out[:, 1:2]
    s = l1 - l0
    e = jnp.exp(-jnp.abs(s))              # in (0, 1]
    inv = 1.0 / (1.0 + e)
    p_hi = inv                            # probability of the larger logit
    p_lo = e * inv
    pos = s >= 0.0
    p0 = jnp.where(pos, p_lo, p_hi)
    p1 = jnp.where(pos, p_hi, p_lo)

    out_ref[...] = out                    # full lane-dense store (value in lane 2)
    out_ref[:, 0:1] = p0                  # overwrite actor logits with probabilities
    out_ref[:, 1:2] = p1


@jax.jit
def actor_critic_forward(x, w_all, b_all):
    """Returns (value of shape (B,), actor probabilities of shape (B, 2))."""
    B, F = x.shape
    TB, B_pad, n_tiles = _choose_tiles(B)

    x_pad = jnp.pad(x.astype(jnp.float32), ((0, B_pad - B), (0, _FEAT_PAD - F)))

    out = pl.pallas_call(
        _actor_critic_kernel,
        grid=(n_tiles,),
        in_specs=[
            pl.BlockSpec((TB, _FEAT_PAD), lambda i: (i, 0),
                         memory_space=pltpu.MemorySpace.VMEM),
            pl.BlockSpec((_W_ROWS, _LANES), lambda i: (0, 0),   # weights resident
                         memory_space=pltpu.MemorySpace.VMEM),
            pl.BlockSpec((_B_ROWS, _LANES), lambda i: (0, 0),   # biases resident
                         memory_space=pltpu.MemorySpace.VMEM),
        ],
        out_specs=pl.BlockSpec((TB, _LANES), lambda i: (i, 0),
                               memory_space=pltpu.MemorySpace.VMEM),
        out_shape=jax.ShapeDtypeStruct((B_pad, _LANES), jnp.float32),
        compiler_params=pltpu.CompilerParams(dimension_semantics=("parallel",)),
    )(x_pad, w_all, b_all)

    probs = out[:B, 0:2]
    value = out[:B, 2]
    return value, probs


def pack_params(actor_params, critic_target_params):
    """Pack the 8 Linear layers into one block-diagonal weight slab + one bias slab."""
    (aw1, ab1), (aw2, ab2), (aw3, ab3), (aw4, ab4) = actor_params
    (cw1, cb1), (cw2, cb2), (cw3, cb3), (cw4, cb4) = critic_target_params
    f32 = jnp.float32

    # Layer 1: rows 0:4 = real input features, rows 4:8 = zero (input is zero-padded).
    W1 = (jnp.zeros((_FEAT_PAD, _LANES), f32)
          .at[0:4, 0:16].set(aw1).at[0:4, 16:32].set(cw1))
    b1 = jnp.zeros((_LANES,), f32).at[0:16].set(ab1[0]).at[16:32].set(cb1[0])

    def _mid(aw, ab, cw, cb):
        W = (jnp.zeros((_HID, _LANES), f32)
             .at[0:16, 0:16].set(aw).at[16:32, 16:32].set(cw))
        b = jnp.zeros((_LANES,), f32).at[0:16].set(ab[0]).at[16:32].set(cb[0])
        return W, b

    W2, b2 = _mid(aw2, ab2, cw2, cb2)
    W3, b3 = _mid(aw3, ab3, cw3, cb3)

    # Layer 4 heads: lanes 0,1 <- actor logits, lane 2 <- critic_target value.
    W4 = (jnp.zeros((_HID, _LANES), f32)
          .at[0:16, 0:2].set(aw4).at[16:32, 2:3].set(cw4))
    b4 = jnp.zeros((_LANES,), f32).at[0:2].set(ab4[0]).at[2].set(cb4[0, 0])

    w_all = jnp.concatenate([W1, W2, W3, W4], axis=0)    # (104, 128)
    b_all = jnp.stack([b1, b2, b3, b4], axis=0)          # (4, 128)
    return w_all, b_all


def init_linear(key, fan_in, fan_out):
    """PyTorch-style uniform(-1/sqrt(fan_in), 1/sqrt(fan_in)) init."""
    kw, kb = jax.random.split(key)
    bound = 1.0 / (fan_in ** 0.5)
    W = jax.random.uniform(kw, (fan_in, fan_out), jnp.float32, -bound, bound)
    b = jax.random.uniform(kb, (1, fan_out), jnp.float32, -bound, bound)
    return W, b


def init_mlp(key, dims):
    keys = jax.random.split(key, len(dims) - 1)
    return [init_linear(k, dims[i], dims[i + 1]) for i, k in enumerate(keys)]


def reference_forward(x, actor_params, critic_target_params):
    """Plain-JAX reference mirroring the PyTorch module's forward()."""
    h = x
    for i, (W, b) in enumerate(critic_target_params):
        h = h @ W + b
        if i < len(critic_target_params) - 1:
            h = jnp.tanh(h)
    value = h[:, 0]

    a = x
    for i, (W, b) in enumerate(actor_params):
        a = a @ W + b
        if i < len(actor_params) - 1:
            a = jnp.tanh(a)
    probs = jax.nn.softmax(a, axis=1)
    return value, probs


# TODO(synk): run_model (gym environment loop) and update_target (host-side
# critic -> critic_target state copy) have no Pallas equivalent; only forward()
# is implemented as a kernel.

if __name__ == "__main__":
    key = jax.random.PRNGKey(0)
    k_x, k_x2, k_actor, k_critic = jax.random.split(key, 4)

    # actor: 4 -> 16 -> 16 -> 16 -> 2 ; critic_target: 4 -> 16 -> 16 -> 16 -> 1
    actor_params = init_mlp(k_actor, (4, 16, 16, 16, 2))
    critic_target_params = init_mlp(k_critic, (4, 16, 16, 16, 1))
    w_all, b_all = pack_params(actor_params, critic_target_params)

    # Small primary test batch.
    B = 8
    x = jax.random.normal(k_x, (B, 4), dtype=jnp.float32)
    value, probs = actor_critic_forward(x, w_all, b_all)
    jax.block_until_ready((value, probs))

    ref_value, ref_probs = reference_forward(x, actor_params, critic_target_params)
    assert value.shape == (B,) and probs.shape == (B, 2)
    assert jnp.allclose(value, ref_value, atol=1e-5, rtol=1e-5)
    assert jnp.allclose(probs, ref_probs, atol=1e-5, rtol=1e-5)
    assert jnp.allclose(jnp.sum(probs, axis=1), 1.0, atol=1e-5)

    # Secondary test: non-multiple-of-8 batch (exercises padding path).
    B2 = 37
    x2 = jax.random.normal(k_x2, (B2, 4), dtype=jnp.float32)
    value2, probs2 = actor_critic_forward(x2, w_all, b_all)
    jax.block_until_ready((value2, probs2))
    ref_value2, ref_probs2 = reference_forward(x2, actor_params, critic_target_params)
    assert value2.shape == (B2,) and probs2.shape == (B2, 2)
    assert jnp.allclose(value2, ref_value2, atol=1e-5, rtol=1e-5)
    assert jnp.allclose(probs2, ref_probs2, atol=1e-5, rtol=1e-5)

    print("KERNEL_OK")
</pallas_src>

<mosaic_0001>
module attributes {stable_mosaic.version = 11 : i64} {
  func.func @_actor_critic_kernel(%arg0: i32, %arg1: memref<8x8xf32, #tpu.memory_space<vmem>>, %arg2: memref<104x128xf32, #tpu.memory_space<vmem>>, %arg3: memref<4x128xf32, #tpu.memory_space<vmem>>, %arg4: memref<8x128xf32, #tpu.memory_space<vmem>>) attributes {dimension_semantics = [#tpu.dimension_semantics<parallel>], iteration_bounds = array<i64: 1>, scalar_prefetch = 0 : i64, scratch_operands = 0 : i64, tpu.core_type = #tpu.core_type<tc>, window_params = [{transform_indices = @transform_0, window_bounds = array<i64: 8, 8>}, {pipeline_mode = #tpu.pipeline_mode<synchronous>, transform_indices = @transform_1, window_bounds = array<i64: 104, 128>}, {pipeline_mode = #tpu.pipeline_mode<synchronous>, transform_indices = @transform_2, window_bounds = array<i64: 4, 128>}, {transform_indices = @transform_3, window_bounds = array<i64: 8, 128>}]} {
    %c0 = arith.constant 0 : index
    %c0_0 = arith.constant 0 : index
    %0 = vector.load %arg1[%c0, %c0_0] : memref<8x8xf32, #tpu.memory_space<vmem>>, vector<8x8xf32>
    %c0_1 = arith.constant 0 : index
    %c0_2 = arith.constant 0 : index
    %1 = vector.load %arg2[%c0_1, %c0_2] : memref<104x128xf32, #tpu.memory_space<vmem>>, vector<8x128xf32>
    %cst = arith.constant dense<0.000000e+00> : vector<8x128xf32>
    %2 = tpu.matmul %0, %1, %cst {dimension_numbers = #tpu.dot_dimension_numbers<[1], [0], [0], [1], [0, 0, 1, 1], [], []>} : vector<8x8xf32>, vector<8x128xf32>, vector<8x128xf32> -> vector<8x128xf32>
    %3 = vector.extract_strided_slice %2 {offsets = [0, 0], sizes = [8, 32], strides = [1, 1]} : vector<8x128xf32> to vector<8x32xf32>
    %c0_3 = arith.constant 0 : index
    %c0_4 = arith.constant 0 : index
    %4 = vector.load %arg3[%c0_3, %c0_4] : memref<4x128xf32, #tpu.memory_space<vmem>>, vector<1x32xf32>
    %5 = vector.broadcast %4 : vector<1x32xf32> to vector<8x32xf32>
    %6 = arith.addf %3, %5 : vector<8x32xf32>
    %7 = math.tanh %6 : vector<8x32xf32>
    %c8 = arith.constant 8 : index
    %c0_5 = arith.constant 0 : index
    %8 = vector.load %arg2[%c8, %c0_5] : memref<104x128xf32, #tpu.memory_space<vmem>>, vector<32x128xf32>
    %cst_6 = arith.constant dense<0.000000e+00> : vector<8x128xf32>
    %9 = tpu.matmul %7, %8, %cst_6 {dimension_numbers = #tpu.dot_dimension_numbers<[1], [0], [0], [1], [0, 0, 1, 1], [], []>} : vector<8x32xf32>, vector<32x128xf32>, vector<8x128xf32> -> vector<8x128xf32>
    %10 = vector.extract_strided_slice %9 {offsets = [0, 0], sizes = [8, 32], strides = [1, 1]} : vector<8x128xf32> to vector<8x32xf32>
    %c1 = arith.constant 1 : index
    %c0_7 = arith.constant 0 : index
    %11 = vector.load %arg3[%c1, %c0_7] : memref<4x128xf32, #tpu.memory_space<vmem>>, vector<1x32xf32>
    %12 = vector.broadcast %11 : vector<1x32xf32> to vector<8x32xf32>
    %13 = arith.addf %10, %12 : vector<8x32xf32>
    %14 = math.tanh %13 : vector<8x32xf32>
    %c40 = arith.constant 40 : index
    %c0_8 = arith.constant 0 : index
    %15 = vector.load %arg2[%c40, %c0_8] : memref<104x128xf32, #tpu.memory_space<vmem>>, vector<32x128xf32>
    %cst_9 = arith.constant dense<0.000000e+00> : vector<8x128xf32>
    %16 = tpu.matmul %14, %15, %cst_9 {dimension_numbers = #tpu.dot_dimension_numbers<[1], [0], [0], [1], [0, 0, 1, 1], [], []>} : vector<8x32xf32>, vector<32x128xf32>, vector<8x128xf32> -> vector<8x128xf32>
    %17 = vector.extract_strided_slice %16 {offsets = [0, 0], sizes = [8, 32], strides = [1, 1]} : vector<8x128xf32> to vector<8x32xf32>
    %c2 = arith.constant 2 : index
    %c0_10 = arith.constant 0 : index
    %18 = vector.load %arg3[%c2, %c0_10] : memref<4x128xf32, #tpu.memory_space<vmem>>, vector<1x32xf32>
    %19 = vector.broadcast %18 : vector<1x32xf32> to vector<8x32xf32>
    %20 = arith.addf %17, %19 : vector<8x32xf32>
    %21 = math.tanh %20 : vector<8x32xf32>
    %c72 = arith.constant 72 : index
    %c0_11 = arith.constant 0 : index
    %22 = vector.load %arg2[%c72, %c0_11] : memref<104x128xf32, #tpu.memory_space<vmem>>, vector<32x128xf32>
    %cst_12 = arith.constant dense<0.000000e+00> : vector<8x128xf32>
    %23 = tpu.matmul %21, %22, %cst_12 {dimension_numbers = #tpu.dot_dimension_numbers<[1], [0], [0], [1], [0, 0, 1, 1], [], []>} : vector<8x32xf32>, vector<32x128xf32>, vector<8x128xf32> -> vector<8x128xf32>
    %c3 = arith.constant 3 : index
    %c0_13 = arith.constant 0 : index
    %24 = vector.load %arg3[%c3, %c0_13] : memref<4x128xf32, #tpu.memory_space<vmem>>, vector<1x128xf32>
    %25 = vector.broadcast %24 : vector<1x128xf32> to vector<8x128xf32>
    %26 = arith.addf %23, %25 : vector<8x128xf32>
    %27 = vector.extract_strided_slice %26 {offsets = [0, 0], sizes = [8, 1], strides = [1, 1]} : vector<8x128xf32> to vector<8x1xf32>
    %28 = vector.extract_strided_slice %26 {offsets = [0, 1], sizes = [8, 1], strides = [1, 1]} : vector<8x128xf32> to vector<8x1xf32>
    %29 = arith.subf %28, %27 : vector<8x1xf32>
    %30 = math.absf %29 : vector<8x1xf32>
    %cst_14 = arith.constant 0.000000e+00 : f32
    %31 = vector.broadcast %cst_14 : f32 to vector<8x1xf32>
    %32 = arith.subf %31, %30 : vector<8x1xf32>
    %33 = math.exp %32 : vector<8x1xf32>
    %cst_15 = arith.constant 1.000000e+00 : f32
    %34 = vector.broadcast %cst_15 : f32 to vector<8x1xf32>
    %35 = arith.addf %34, %33 : vector<8x1xf32>
    %cst_16 = arith.constant 1.000000e+00 : f32
    %36 = vector.broadcast %cst_16 : f32 to vector<8x1xf32>
    %37 = arith.divf %36, %35 : vector<8x1xf32>
    %38 = arith.mulf %33, %37 : vector<8x1xf32>
    %cst_17 = arith.constant 0.000000e+00 : f32
    %39 = vector.broadcast %cst_17 : f32 to vector<8x1xf32>
    %40 = arith.cmpf oge, %29, %39 : vector<8x1xf32>
    %41 = arith.select %40, %38, %37 : vector<8x1xi1>, vector<8x1xf32>
    %42 = arith.select %40, %37, %38 : vector<8x1xi1>, vector<8x1xf32>
    %c0_18 = arith.constant 0 : index
    %c0_19 = arith.constant 0 : index
    %43 = vector.load %arg4[%c0_18, %c0_19] : memref<8x128xf32, #tpu.memory_space<vmem>>, vector<8x128xf32>
    tpu.vector_store %arg4[%c0_18, %c0_19], %26 {strides = array<i32>} : memref<8x128xf32, #tpu.memory_space<vmem>>, vector<8x128xf32>,
    %c0_20 = arith.constant 0 : index
    %c0_21 = arith.constant 0 : index
    %44 = vector.load %arg4[%c0_20, %c0_21] : memref<8x128xf32, #tpu.memory_space<vmem>>, vector<8x1xf32>
    tpu.vector_store %arg4[%c0_20, %c0_21], %41 {strides = array<i32>} : memref<8x128xf32, #tpu.memory_space<vmem>>, vector<8x1xf32>,
    %c0_22 = arith.constant 0 : index
    %c1_23 = arith.constant 1 : index
    %45 = vector.load %arg4[%c0_22, %c1_23] : memref<8x128xf32, #tpu.memory_space<vmem>>, vector<8x1xf32>
    tpu.vector_store %arg4[%c0_22, %c1_23], %42 {strides = array<i32>} : memref<8x128xf32, #tpu.memory_space<vmem>>, vector<8x1xf32>,
    return
  }
  func.func @transform_0(%arg0: i32) -> (i32, i32) {
    %c0_i32 = arith.constant 0 : i32
    %c0_i32_0 = arith.constant 0 : i32
    return %arg0, %c0_i32 : i32, i32
  }
  func.func @transform_1(%arg0: i32) -> (i32, i32) {
    %c0_i32 = arith.constant 0 : i32
    %c0_i32_0 = arith.constant 0 : i32
    %c0_i32_1 = arith.constant 0 : i32
    return %c0_i32, %c0_i32_0 : i32, i32
  }
  func.func @transform_2(%arg0: i32) -> (i32, i32) {
    %c0_i32 = arith.constant 0 : i32
    %c0_i32_0 = arith.constant 0 : i32
    %c0_i32_1 = arith.constant 0 : i32
    return %c0_i32, %c0_i32_0 : i32, i32
  }
  func.func @transform_3(%arg0: i32) -> (i32, i32) {
    %c0_i32 = arith.constant 0 : i32
    %c0_i32_0 = arith.constant 0 : i32
    return %arg0, %c0_i32 : i32, i32
  }
}

</mosaic_0001>

<bundles_post_ra>
// kernel: actor_critic_forward.1
= control target key start
LH: loop header
LB: loop body
LE: loop exit
PB: predicated region body
PF: predicated region fallthrough
CT: control target
= control target key end

     0   :  { %8 = vsyncpa [#allocation3], 0  ;;  %s494_s12 = smov [#allocation2]   ;;  %s555_s0 = inlined_call_operand.vmem [shape: f32[8,8], index: 0, kind: input, shape index: {}]   ;;  %s556_s1 = inlined_call_operand.hbm [shape: f32[104,128], index: 1, kind: input, shape index: {}]   ;;  %s557_s2 = inlined_call_operand.vmem [shape: f32[4,128], index: 2, kind: input, shape index: {}]   ;;  %s558_s3 = inlined_call_operand.vmem [shape: f32[8,128], index: 3, kind: output, shape index: {}]  }
   0x1   :  { %s16_s13 = sshll.u32 %s494_s12, 4  ;;  %s17_s13 = int_to_ptr.vmem [resolvable:$true] %s16_s13 }
   0x2   :  { %s480_s14 = scalar_lea.vmem %s17_s13, 1664  ;;  %p485_p1 = scmp.lt.s32.totalorder %s17_s13, %s17_s13 }
   0x3   :  { %p481_p0 = scmp.ne.s32.totalorder %s17_s13, %s480_s14  ;;  %p486_p2 = scmp.lt.s32.totalorder %s480_s14, %s480_s14 }
   0x5   :  { %p487_p3 = por %p486_p2, %p485_p1 }
   0x7   :  { %p488_p4 = pnand %p487_p3, %p481_p0 }
   0x9   :  { %491 = shalt.err (!%p488_p4)
}
   0xa   :  { %s495_s15 = smov 128   ;;  %s496_s16 = smov 8  }
   0xb   :  { %22 = dma.hbm_to_vmem [thread:$0]  %s556_s1, 1664, %s17_s13, [#allocation3], %s495_s15, %s495_s15, %s496_s16  }
   0xc   :  { %492 = dma.done.wait [#allocation3], 1664  }
   0xd   :  { %493 = vsyncadd [#allocation3], 4294965632  ;;  %v497_v0 = vmov 0.0   ;;  %vm498_vm0 = vmmov 0   ;;  %vm30_vm1 = vcmask 64512   ;;  %v29_v1 = vld [vmem:[#allocation2] sm:$0xff] }
   0xe   :  { %417 = vmatprep.subr.mxu0 %v497_v0  ;;  %419 = vmatprep.mubr.msk.f32.mxu0 %vm498_vm0, %v497_v0  ;;  %v28_v2 = vld [vmem:[%s555_s0] sm:$0xff]  ;;  %v113_v4 = vld [vmem:[#allocation2 + $0x18] sm:$0xff]  ;;  %v112_v5 = vld [vmem:[#allocation2 + $0x10] sm:$0xff]  ;;  %vm115_vm2 = vcmask 261120   ;;  %s499_s29 = smov 1   ;;  %vm383_vm4 = vcmask 7168  }
   0xf   :  { %422 = vmatprep.subr.mxu1 %v497_v0  ;;  %430 = vmatprep.mubr.msk.f32.mxu1 %vm498_vm0, %v497_v0  ;;  %v114_v3 = vld [vmem:[#allocation2 + $0x20] sm:$0xff]  ;;  %v111_v6 = vld [vmem:[#allocation2 + $0x8] sm:$0xff]  ;;  %v198_v13 = vld [vmem:[#allocation2 + $0x38] sm:$0xff]  ;;  %vm385_vm5 = vcmask 15368  }
  0x10   :  { %418 = vmatpush3.msra.mxu0 %v29_v1  ;;  %423 = vmatpush3.msra.mxu1 %v114_v3  ;;  %v393_v7 = vld [vmem:[%s557_s2] ss:$0 sm:$0xff]  ;;  %v197_v14 = vld [vmem:[#allocation2 + $0x30] sm:$0xff]  ;;  %v196_v15 = vld [vmem:[#allocation2 + $0x28] sm:$0xff] }
  0x11   :  { %420 = vmatmul.mubr.msk.f32.vlgmr.msra.gmra.mxu0 %vm30_vm1, %v28_v2  ;;  %433 = vmatprep.subr.mxu0 %v497_v0  ;;  %v199_v12 = vld [vmem:[#allocation2 + $0x40] sm:$0xff]  ;;  %v282_v22 = vld [vmem:[#allocation2 + $0x58] sm:$0xff]  ;;  %v281_v23 = vld [vmem:[#allocation2 + $0x50] sm:$0xff] }
  0x12   :  { %441 = vmatprep.mubr.msk.f32.mxu0 %vm498_vm0, %v497_v0  ;;  %424 = vmatprep.subr.mxu1 %v497_v0  ;;  %v395_v16 = vld [vmem:[%s557_s2 + $0x1] ss:$0 sm:$0xff]  ;;  %v280_v24 = vld [vmem:[#allocation2 + $0x48] sm:$0xff]  ;;  %v397_v25 = vld [vmem:[%s557_s2 + $0x2] ss:$0 sm:$0xff] }
  0x13   :  { %425 = vmatpush3.msra.mxu1 %v113_v4  ;;  %434 = vmatpush3.msra.mxu0 %v199_v12  ;;  %v283_v21 = vld [vmem:[#allocation2 + $0x60] sm:$0xff] }
  0x14   :  { %426 = vmatprep.subr.mxu1 %v497_v0  ;;  %435 = vmatprep.subr.mxu0 %v497_v0  ;;  %v398_v30 = vld [vmem:[%s557_s2 + $0x3] ss:$0 sm:$0xff]  ;;  %s500_s2 = smov 127  }
  0x15   :  { %427 = vmatpush3.msra.mxu1 %v112_v5  ;;  %436 = vmatpush3.msra.mxu0 %v198_v13 }
  0x16   :  { %428 = vmatprep.subr.mxu1 %v497_v0  ;;  %437 = vmatprep.subr.mxu0 %v497_v0 }
  0x17   :  { %429 = vmatpush3.msra.mxu1 %v111_v6  ;;  %438 = vmatpush3.msra.mxu0 %v197_v14 }
  0x18   :  { %444 = vmatprep.subr.mxu1 %v497_v0  ;;  %439 = vmatprep.subr.mxu0 %v497_v0 }
  0x19   :  { %440 = vmatpush3.msra.mxu0 %v196_v15 }
  0xd1   :  { %v100_v8 = vpop.f32.mrf.mxu0 }
  0xd2   :  { %v109_v9 = vadd.f32 %v393_v7, %v100_v8 }
  0xd3   :  { %v421_v10 = vpop.f32.mrf.mxu0 }
  0xd4   :  { %462 = vtanh.f32 %v109_v9 }
  0xe1   :  { %v463_v11 = vpop.eup %462 }
  0xe2   :  { %431 = vmatmul.mubr.msk.f32.vlgmr.msra.gmra.mxu1 %vm115_vm2, %v463_v11 }
  0xe3   :  { %452 = vmatprep.mubr.msk.f32.mxu1 %vm498_vm0, %v497_v0  ;;  %445 = vmatpush3.msra.mxu1 %v283_v21 }
  0xe4   :  { %446 = vmatprep.subr.mxu1 %v497_v0 }
  0xe5   :  { %447 = vmatpush3.msra.mxu1 %v282_v22 }
  0xe6   :  { %448 = vmatprep.subr.mxu1 %v497_v0 }
  0xe7   :  { %449 = vmatpush3.msra.mxu1 %v281_v23 }
  0xe8   :  { %450 = vmatprep.subr.mxu1 %v497_v0 }
  0xe9   :  { %451 = vmatpush3.msra.mxu1 %v280_v24 }
 0x1a2   :  { %v185_v17 = vpop.f32.mrf.mxu1 }
 0x1a3   :  { %v194_v18 = vadd.f32 %v395_v16, %v185_v17 }
 0x1a4   :  { %v432_v19 = vpop.f32.mrf.mxu1 }
 0x1a5   :  { %464 = vtanh.f32 %v194_v18 }
 0x1b2   :  { %v465_v20 = vpop.eup %464 }
 0x1b3   :  { %442 = vmatmul.mubr.msk.f32.vlgmr.msra.gmra.mxu0 %vm115_vm2, %v465_v20 }
 0x273   :  { %v269_v26 = vpop.f32.mrf.mxu0 }
 0x274   :  { %v278_v27 = vadd.f32 %v397_v25, %v269_v26 }
 0x275   :  { %v443_v28 = vpop.f32.mrf.mxu0 }
 0x276   :  { %466 = vtanh.f32 %v278_v27 }
 0x283   :  { %v467_v29 = vpop.eup %466 }
 0x284   :  { %453 = vmatmul.mubr.msk.f32.vlgmr.msra.gmra.mxu1 %vm115_vm2, %v467_v29 }
 0x344   :  { %v358_v31 = vpop.f32.mrf.mxu1 }
 0x345   :  { %v359_v32 = vadd.f32 %v398_v30, %v358_v31 }
 0x346   :  { %v454_v33 = vpop.f32.mrf.mxu1 }
 0x347   :  { %378 = vst [vmem:[%s558_s3] sm:$0xff] %v359_v32  ;;  %363 = vrot.lane.b32.xlu0 %v359_v32, %s499_s29 }
 0x3b9   :  { %v364_v34 = vpop.permute.xlu0 %363 }
 0x3ba   :  { %v366_v35 = vsub.f32 %v359_v32, %v364_v34 }
 0x3bc   :  { %v367_v36 = vand.u32 2147483647, %v366_v35  ;;  %vm375_vm3 = vcmp.ge.f32.partialorder %v366_v35, 0.0 }
 0x3be   :  { %v368_v37 = vsub.f32 0.0, %v367_v36 }
 0x3c0   :  { %v369_v38 = vmul.f32 1.442695, %v368_v37 }
 0x3c2   :  { %468 = vpow2.f32 %v369_v38 }
 0x3cf   :  { %v469_v39 = vpop.eup %468 }
 0x3d0   :  { %v371_v40 = vadd.f32 1.0, %v469_v39 }
 0x3d2   :  { %470 = vrcp.f32 %v371_v40 }
 0x3df   :  { %v471_v41 = vpop.eup %470 }
 0x3e0   :  { %v374_v42 = vmul.f32 %v471_v41, %v469_v39 }
 0x3e2   :  { %v377_v43 = vsel %vm375_vm3, %v471_v41, %v374_v42  ;;  %v376_v44 = vsel %vm375_vm3, %v374_v42, %v471_v41 }
 0x3e3   :  { %380 = vrot.lane.b32.xlu0 %v376_v44, %s500_s2 }
 0x455   :  { %v381_v45 = vpop.permute.xlu0 %380 }
 0x456   :  { %384 = vst.msk [vmem:[%s558_s3] sm:$0xff] %vm383_vm4, %v381_v45 }
 0x457   :  { %386 = vst.msk [vmem:[%s558_s3] sm:$0xff] %vm385_vm5, %v377_v43 }
 0x458   :  { %391 = vsyncpa [#allocation3], 1 }

</bundles_post_ra>
